<compile_context>
chip_gen: v7x
topology: tpu7x:2x2x1
jax: 0.10.0
libtpu: 0.0.40
codegen_flags: <defaults>
</compile_context>

<pallas_src>
import functools

import jax
import jax.numpy as jnp
from jax.experimental import pallas as pl
from jax.experimental.pallas import tpu as pltpu


_VMEM_INPUT_BUDGET = 12 << 20   # bytes for the double-buffered input slab (2 buffers)
_TARGET_BLOCK_BYTES = 2 << 20   # aim ~2 MiB per block to amortize per-step overhead
_MAX_B_TILE = 16                # cap on batch elements packed into one block


def _largest_divisor_leq(n: int, cap: int) -> int:
    cap = max(1, min(n, cap))
    for d in range(cap, 0, -1):
        if n % d == 0:
            return d
    return 1


def _pick_tiles(n: int, c: int, hw: int):
    """Pick (b_tile, tile_hw).  b_tile divides n; tile_hw == hw or a 128-multiple."""
    c_pad = -(-c // 8) * 8                 # f32 sublane padding of the (C, T) plane
    row_bytes = c_pad * 4                  # one spatial column across channels (f32)
    max_block = _VMEM_INPUT_BUDGET // 2    # per-buffer cap (double-buffered)
    image_bytes = row_bytes * hw

    if image_bytes <= max_block:
        # Whole spatial extent fits in one block; pack batch elements up to the
        # byte target, but keep >= 2 batch steps so both TCs get work.
        tile_hw = hw
        want_b = max(1, _TARGET_BLOCK_BYTES // image_bytes)
        want_b = min(want_b, _MAX_B_TILE, max(1, max_block // image_bytes))
        if n >= 2:
            want_b = min(want_b, n // 2)
        b_tile = _largest_divisor_leq(n, max(1, want_b))
        return b_tile, tile_hw

    # Image too large for one block: stream the flattened spatial axis, one
    # batch element per block, tile sized near the byte target (128-multiple).
    lanes_cap = max_block // row_bytes
    lanes_want = max(1, _TARGET_BLOCK_BYTES // row_bytes)
    tile_hw = max(128, (min(lanes_cap, lanes_want) // 128) * 128)
    tile_hw = min(tile_hw, hw) if hw < tile_hw else tile_hw
    return 1, tile_hw


def _ssam_kernel(alpha_ref, x_ref, o_ref, acc_ref, *,
                 inv_h, inv_w, hw_total, tile_hw, needs_mask):
    # alpha_ref: SMEM (1,)
    # x_ref:     VMEM (B_TILE, C, TILE_HW)
    # o_ref:     VMEM (B_TILE, 2C, 1)
    # acc_ref:   VMEM (B_TILE, C, 128) f32 scratch (lane-wide running sum)
    hw_step = pl.program_id(1)
    last = pl.num_programs(1) - 1

    @pl.when(hw_step == 0)
    def _():
        acc_ref[...] = jnp.zeros_like(acc_ref)

    # Scale by 1/alpha (scalar reciprocal once).  Applied before the channel
    # max, so the softmax is exact for any sign of alpha.
    inv_alpha = 1.0 / alpha_ref[0]
    x = x_ref[...].astype(jnp.float32) * inv_alpha              # (B, C, T)  VPU

    # Softmax2d == softmax over channels at every spatial location.
    m = jnp.max(x, axis=1, keepdims=True)                       # (B, 1, T)  XLU (sublane)
    e = jnp.exp(x - m)                                          # (B, C, T)  EUP
    denom = jnp.sum(e, axis=1, keepdims=True)                   # (B, 1, T)  XLU (sublane)
    contrib = e * pl.reciprocal(denom, approx=False)            # (B, C, T)  VPU (exact)

    nfull = tile_hw // 128
    rem = tile_hw - nfull * 128

    def accumulate(p):
        # Fold TILE_HW lanes into the 128-lane accumulator with VPU adds on
        # static 128-aligned slices; no per-step cross-lane XLU reduce.
        if nfull:
            s = p[:, :, 0:128]
            for k in range(1, nfull):
                s = s + p[:, :, k * 128:(k + 1) * 128]
            acc_ref[...] += s
        if rem:  # only when TILE_HW == HW and HW is not a 128-multiple
            acc_ref[:, :, :1] += jnp.sum(p[:, :, nfull * 128:], axis=-1,
                                         keepdims=True)

    if needs_mask:
        # Ragged HW tail: mask only on the last step (all other steps are fully
        # in-bounds and skip the iota/compare/select entirely).
        @pl.when(hw_step < last)
        def _():
            accumulate(contrib)

        @pl.when(hw_step == last)
        def _():
            lane = jax.lax.broadcasted_iota(jnp.int32, contrib.shape, 2)
            valid = (hw_step * tile_hw + lane) < hw_total
            accumulate(jnp.where(valid, contrib, 0.0))
    else:
        accumulate(contrib)

    @pl.when(hw_step == last)
    def _():
        # Single cross-lane reduce of the 128-lane accumulator, once per block.
        total = jnp.sum(acc_ref[...], axis=-1, keepdims=True)   # (B, C, 1)
        c = total.shape[1]
        # mean_H(sum_W(.)) == total / H ;  mean_W(sum_H(.)) == total / W
        o_ref[:, :c, :] = (total * inv_h).astype(o_ref.dtype)
        o_ref[:, c:, :] = (total * inv_w).astype(o_ref.dtype)


def spatial_soft_argmax(x, alpha, *, tile_hw=None, b_tile=None):
    """x: (N, C, H, W) float, alpha: (1,) float -> (N, 2*C)."""
    n, c, h, w = x.shape
    hw = h * w
    x2 = x.reshape(n, c, hw)

    auto_b, auto_t = _pick_tiles(n, c, hw)
    if tile_hw is None:
        tile_hw = auto_t
    if b_tile is None:
        b_tile = auto_b

    assert tile_hw == hw or tile_hw % 128 == 0, \
        "tile must be the full HW extent or a 128-multiple"
    assert n % b_tile == 0, "b_tile must divide the batch size"

    nb = n // b_tile
    num_hw = pl.cdiv(hw, tile_hw)
    needs_mask = (hw % tile_hw) != 0

    kern = functools.partial(
        _ssam_kernel,
        inv_h=float(1.0 / h), inv_w=float(1.0 / w),
        hw_total=hw, tile_hw=tile_hw, needs_mask=needs_mask)

    itemsize = x.dtype.itemsize
    cost = pl.CostEstimate(
        flops=5 * n * c * hw,
        transcendentals=n * c * hw,
        bytes_accessed=n * c * hw * itemsize + n * 2 * c * itemsize + 4,
    )

    out = pl.pallas_call(
        kern,
        out_shape=jax.ShapeDtypeStruct((n, 2 * c, 1), x.dtype),
        grid=(nb, num_hw),
        in_specs=[
            pl.BlockSpec(memory_space=pltpu.MemorySpace.SMEM),            # alpha (1,)
            pl.BlockSpec((b_tile, c, tile_hw), lambda i, j: (i, 0, j)),   # streamed slab
        ],
        # Same output block across the HW axis -> stays resident; written once.
        out_specs=pl.BlockSpec((b_tile, 2 * c, 1), lambda i, j: (i, 0, 0)),
        scratch_shapes=[pltpu.VMEM((b_tile, c, 128), jnp.float32)],
        compiler_params=pltpu.CompilerParams(
            dimension_semantics=("parallel", "arbitrary"),
            vmem_limit_bytes=32 * 1024 * 1024),
        cost_estimate=cost,
    )(alpha, x2)
    return out.reshape(n, 2 * c)


def _reference(x, alpha):
    sm = jax.nn.softmax(x / alpha, axis=1)
    x_x = jnp.mean(jnp.sum(sm, axis=3), axis=2)
    x_y = jnp.mean(jnp.sum(sm, axis=2), axis=2)
    return jnp.concatenate((x_x, x_y), axis=1)


if __name__ == "__main__":
    key = jax.random.PRNGKey(0)
    k_x, k_a, k_x2 = jax.random.split(key, 3)

    # Deterministic inputs (alpha mirrors Parameter(torch.rand(1)): positive).
    x = jax.random.normal(k_x, (2, 4, 16, 16), dtype=jnp.float32)
    alpha = jax.random.uniform(k_a, (1,), dtype=jnp.float32)
    ref = _reference(x, alpha)

    # Default (auto-picked) tiling.
    out = jax.block_until_ready(spatial_soft_argmax(x, alpha))
    assert out.shape == (2, 8), out.shape
    assert jnp.allclose(out, ref, rtol=1e-5, atol=1e-5)

    # Multi-step HW accumulation + batch packing (block (2, 4, 128), 2 HW steps).
    out_tiled = jax.block_until_ready(
        spatial_soft_argmax(x, alpha, tile_hw=128, b_tile=2))
    assert jnp.allclose(out_tiled, ref, rtol=1e-5, atol=1e-5)

    # HW not a multiple of 128 (HW = 320): exercises the remainder-chunk path
    # (single full-extent tile) and the last-step-only ragged-tail mask path.
    x_ragged = jax.random.normal(k_x2, (2, 4, 16, 20), dtype=jnp.float32)
    ref_ragged = _reference(x_ragged, alpha)
    out_full = jax.block_until_ready(spatial_soft_argmax(x_ragged, alpha))
    assert jnp.allclose(out_full, ref_ragged, rtol=1e-5, atol=1e-5)
    out_masked = jax.block_until_ready(
        spatial_soft_argmax(x_ragged, alpha, tile_hw=256))
    assert jnp.allclose(out_masked, ref_ragged, rtol=1e-5, atol=1e-5)

    print("KERNEL_OK")
</pallas_src>

<mosaic_0001>
module attributes {stable_mosaic.version = 11 : i64} {
  func.func @_ssam_kernel(%arg0: i32, %arg1: i32, %arg2: memref<1xf32, #tpu.memory_space<smem>>, %arg3: memref<1x4x256xf32, #tpu.memory_space<vmem>>, %arg4: memref<1x8x1xf32, #tpu.memory_space<vmem>>, %arg5: memref<1x4x128xf32, #tpu.memory_space<vmem>>) attributes {dimension_semantics = [#tpu.dimension_semantics<parallel>, #tpu.dimension_semantics<arbitrary>], iteration_bounds = array<i64: 2, 1>, scalar_prefetch = 0 : i64, scratch_operands = 1 : i64, tpu.core_type = #tpu.core_type<tc>, window_params = [{transform_indices = @transform_0, window_bounds = array<i64: 1>}, {transform_indices = @transform_1, window_bounds = array<i64: 1, 4, 256>}, {transform_indices = @transform_2, window_bounds = array<i64: 1, 8, 1>}]} {
    %c0_i32 = arith.constant 0 : i32
    %0 = arith.cmpi eq, %arg1, %c0_i32 : i32
    %1 = arith.extui %0 : i1 to i32
    %c0_i32_0 = arith.constant 0 : i32
    %2 = arith.cmpi ne, %1, %c0_i32_0 : i32
    scf.if %2 {
      %cst_14 = arith.constant 0.000000e+00 : f32
      %27 = vector.broadcast %cst_14 : f32 to vector<1x4x128xf32>
      %c0_15 = arith.constant 0 : index
      %c0_16 = arith.constant 0 : index
      %c0_17 = arith.constant 0 : index
      %28 = vector.load %arg5[%c0_15, %c0_16, %c0_17] : memref<1x4x128xf32, #tpu.memory_space<vmem>>, vector<1x4x128xf32>
      tpu.vector_store %arg5[%c0_15, %c0_16, %c0_17], %27 {strides = array<i32>} : memref<1x4x128xf32, #tpu.memory_space<vmem>>, vector<1x4x128xf32>,
    } else {
    }
    %c0 = arith.constant 0 : index
    %3 = memref.load %arg2[%c0] : memref<1xf32, #tpu.memory_space<smem>>
    %cst = arith.constant 1.000000e+00 : f32
    %4 = arith.divf %cst, %3 : f32
    %c0_1 = arith.constant 0 : index
    %c0_2 = arith.constant 0 : index
    %c0_3 = arith.constant 0 : index
    %5 = vector.load %arg3[%c0_1, %c0_2, %c0_3] : memref<1x4x256xf32, #tpu.memory_space<vmem>>, vector<1x4x256xf32>
    %6 = vector.broadcast %4 : f32 to vector<1x4x256xf32>
    %7 = arith.mulf %5, %6 : vector<1x4x256xf32>
    %cst_4 = arith.constant dense<0xFF800000> : vector<1x256xf32>
    %8 = vector.multi_reduction <maximumf>, %7, %cst_4 [1] : vector<1x4x256xf32> to vector<1x256xf32>
    %9 = vector.shape_cast %8 : vector<1x256xf32> to vector<1x1x256xf32>
    %10 = vector.broadcast %9 : vector<1x1x256xf32> to vector<1x4x256xf32>
    %11 = arith.subf %7, %10 : vector<1x4x256xf32>
    %12 = math.exp %11 : vector<1x4x256xf32>
    %cst_5 = arith.constant dense<0.000000e+00> : vector<1x256xf32>
    %13 = vector.multi_reduction <add>, %12, %cst_5 [1] : vector<1x4x256xf32> to vector<1x256xf32>
    %14 = vector.shape_cast %13 : vector<1x256xf32> to vector<1x1x256xf32>
    %15 = tpu.reciprocal %14 : vector<1x1x256xf32> -> vector<1x1x256xf32>
    %16 = vector.broadcast %15 : vector<1x1x256xf32> to vector<1x4x256xf32>
    %17 = arith.mulf %12, %16 : vector<1x4x256xf32>
    %18 = vector.extract_strided_slice %17 {offsets = [0, 0, 0], sizes = [1, 4, 128], strides = [1, 1, 1]} : vector<1x4x256xf32> to vector<1x4x128xf32>
    %19 = vector.extract_strided_slice %17 {offsets = [0, 0, 128], sizes = [1, 4, 128], strides = [1, 1, 1]} : vector<1x4x256xf32> to vector<1x4x128xf32>
    %20 = arith.addf %18, %19 : vector<1x4x128xf32>
    %c0_6 = arith.constant 0 : index
    %c0_7 = arith.constant 0 : index
    %c0_8 = arith.constant 0 : index
    %21 = vector.load %arg5[%c0_6, %c0_7, %c0_8] : memref<1x4x128xf32, #tpu.memory_space<vmem>>, vector<1x4x128xf32>
    %22 = arith.addf %21, %20 : vector<1x4x128xf32>
    %c0_9 = arith.constant 0 : index
    %c0_10 = arith.constant 0 : index
    %c0_11 = arith.constant 0 : index
    %23 = vector.load %arg5[%c0_9, %c0_10, %c0_11] : memref<1x4x128xf32, #tpu.memory_space<vmem>>, vector<1x4x128xf32>
    tpu.vector_store %arg5[%c0_9, %c0_10, %c0_11], %22 {strides = array<i32>} : memref<1x4x128xf32, #tpu.memory_space<vmem>>, vector<1x4x128xf32>,
    %c0_i32_12 = arith.constant 0 : i32
    %24 = arith.cmpi eq, %arg1, %c0_i32_12 : i32
    %25 = arith.extui %24 : i1 to i32
    %c0_i32_13 = arith.constant 0 : i32
    %26 = arith.cmpi ne, %25, %c0_i32_13 : i32
    scf.if %26 {
      %c0_14 = arith.constant 0 : index
      %c0_15 = arith.constant 0 : index
      %c0_16 = arith.constant 0 : index
      %27 = vector.load %arg5[%c0_14, %c0_15, %c0_16] : memref<1x4x128xf32, #tpu.memory_space<vmem>>, vector<1x4x128xf32>
      %cst_17 = arith.constant dense<0.000000e+00> : vector<1x4xf32>
      %28 = vector.multi_reduction <add>, %27, %cst_17 [2] : vector<1x4x128xf32> to vector<1x4xf32>
      %29 = vector.shape_cast %28 : vector<1x4xf32> to vector<1x4x1xf32>
      %cst_18 = arith.constant 6.250000e-02 : f32
      %30 = vector.broadcast %cst_18 : f32 to vector<1x4x1xf32>
      %31 = arith.mulf %29, %30 : vector<1x4x1xf32>
      %c0_19 = arith.constant 0 : index
      %c0_20 = arith.constant 0 : index
      %c0_21 = arith.constant 0 : index
      %32 = vector.load %arg4[%c0_19, %c0_20, %c0_21] : memref<1x8x1xf32, #tpu.memory_space<vmem>>, vector<1x4x1xf32>
      tpu.vector_store %arg4[%c0_19, %c0_20, %c0_21], %31 {strides = array<i32>} : memref<1x8x1xf32, #tpu.memory_space<vmem>>, vector<1x4x1xf32>,
      %cst_22 = arith.constant 6.250000e-02 : f32
      %33 = vector.broadcast %cst_22 : f32 to vector<1x4x1xf32>
      %34 = arith.mulf %29, %33 : vector<1x4x1xf32>
      %c0_23 = arith.constant 0 : index
      %c4 = arith.constant 4 : index
      %c0_24 = arith.constant 0 : index
      %35 = vector.load %arg4[%c0_23, %c4, %c0_24] : memref<1x8x1xf32, #tpu.memory_space<vmem>>, vector<1x4x1xf32>
      tpu.vector_store %arg4[%c0_23, %c4, %c0_24], %34 {strides = array<i32>} : memref<1x8x1xf32, #tpu.memory_space<vmem>>, vector<1x4x1xf32>,
    } else {
    }
    return
  }
  func.func @transform_0(%arg0: i32, %arg1: i32) -> i32 {
    %c0_i32 = arith.constant 0 : i32
    %c0_i32_0 = arith.constant 0 : i32
    return %c0_i32 : i32
  }
  func.func @transform_1(%arg0: i32, %arg1: i32) -> (i32, i32, i32) {
    %c0_i32 = arith.constant 0 : i32
    %c0_i32_0 = arith.constant 0 : i32
    return %arg0, %c0_i32, %arg1 : i32, i32, i32
  }
  func.func @transform_2(%arg0: i32, %arg1: i32) -> (i32, i32, i32) {
    %c0_i32 = arith.constant 0 : i32
    %c0_i32_0 = arith.constant 0 : i32
    %c0_i32_1 = arith.constant 0 : i32
    return %arg0, %c0_i32, %c0_i32_0 : i32, i32, i32
  }
}

</mosaic_0001>

<bundles_post_ra>
// kernel: tpu_custom_call.1
= control target key start
LH: loop header
LB: loop body
LE: loop exit
PB: predicated region body
PF: predicated region fallthrough
CT: control target
= control target key end

     0   :  { %s644_s0 = inlined_call_operand.<no memory space> [shape: f32[1], index: 0, kind: input, shape index: {}]   ;;  %s645_s1 = inlined_call_operand.hbm [shape: f32[2,4,256], index: 1, kind: input, shape index: {}]   ;;  %s646_s2 = inlined_call_operand.vmem [shape: f32[2,8,1], index: 2, kind: output, shape index: {}]  }
   0x1   :  { %7 = sst [smem:[#allocation3]] %s644_s0 }
   0x2   :  { %8 = vsyncpa [#allocation5], 0 }
   0x3   :  { %10 = vsyncpa [#allocation5 + $0x1], 0  ;;  %s514_s11 = smov 0   ;;  %s516_s12 = smov 0  }
   0x4   :  { %s518_s13 = smov 0   ;;  %s520_s14 = smov 0  }
   0x5   :  { %s522_s15 = smov 0   ;;  %s524_s16 = smov 0  }
   0x6 LB: > { %s333_s0 = sadd.s32 4294967295, %s492_s16   ;;  %s28_s17 = sadd.s32 1, %s488_s15  ;;  %s492_s16 = sphi %s524_s16, %s16_s16   ;;  %s488_s15 = sphi %s522_s15, %s656_s15   ;;  %s484_s14 = sphi %s520_s14, %s655_s14   ;;  %s480_s13 = sphi %s518_s13, %s654_s13   ;;  %s476_s12 = sphi %s516_s12, %s653_s12   ;;  %s472_s11 = sphi %s514_s11, %s652_s11  }
   0x7   : > { %p30_p0 = scmp.ge.s32.totalorder %s28_s17, 2  ;;  %s58_s18 = sadd.s32 1, %s480_s13 }
   0x8   : > { %p65_p1 = scmp.ne.s32.totalorder %s480_s13, %s476_s12  ;;  %p66_p2 = scmp.eq.s32.totalorder %s492_s16, 0 }
   0x9   : > { %s658_s17 = smov (%p30_p0, %s28_s17), 0  ;;  %p71_p4 = scmp.ne.s32.totalorder %s476_s12, %s472_s11 }
   0xa   : > { %p550_p3 = por %p66_p2, %p65_p1  ;;  %s53_s20 = ssub.s32 %s488_s15, %s658_s17 }
   0xb   : > { %p72_p5 = scmp.eq.s32.totalorder %s333_s0, 0  ;;  %p56_p6 = scmp.eq.s32.totalorder %s53_s20, 0 }
   0xc   : > { %p354_p8 = scmp.lt.s32.totalorder %s492_s16, 2  ;;  %s124_s23 = sand.u32 1, %s480_s13  }
   0xd   : > { %p557_p7 = por %p72_p5, %p71_p4  ;;  %s345_s24 = sshll.u32 %s488_s15, 7 }
   0xe   : > { %s563_s22 = scalar_select %p56_p6, %s480_s13, %s58_s18  }
   0xf   : > { %s337_s25 = sshll.u32 %s124_s23, 3  ;;  %s570_s28 = scalar_lea.hbm %s645_s1, %s345_s24 }
  0x10   : > { %s128_s29 = scalar_lea.vmem [#allocation4], %s337_s25  ;;  %p574_p9 = pnand %p354_p8, %p550_p3 }
  0x11   : > { %s138_s30 = sshll.u32 %s128_s29, 4  ;;  %s125_s4 = scalar_lea.sflag [#allocation5], %s124_s23  ;;  %s578_s30 = int_to_ptr.vmem [resolvable:$true] %s138_s30 }
  0x12   : > { %s412_s5 = scalar_lea.hbm %s570_s28, 128  ;;  %p414_p13 = pneg %p574_p9 }
  0x13   : > { %p413_p12 = scmp.ne.s32.totalorder %s570_s28, %s412_s5  ;;  %s417_s8 = scalar_lea.hbm %s645_s1, 256 }
  0x14   : > { %p418_p2 = scmp.lt.u32.totalorder %s570_s28, %s645_s1  ;;  %p419_p3 = scmp.lt.u32.totalorder %s417_s8, %s412_s5 }
  0x15   : > { %p415_p0 = pnand %p414_p13, %p413_p12  ;;  %p421_p5 = scmp.lt.u32.totalorder %s412_s5, %s570_s28 }
  0x16   : > { %p420_p4 = por %p419_p3, %p418_p2 }
  0x17   : > { %p416_p1 = pneg %p415_p0 }
  0x18   : > { %p422_p6 = por %p421_p5, %p420_p4 }
  0x1a   : > { %p423_p8 = pnand %p422_p6, %p416_p1 }
  0x1c   : > { %426 = shalt.err (!%p423_p8)
}
  0x1d   : > { %s427_s11 = scalar_lea.vmem %s578_s30, 128  ;;  %s494_s0 = smov [#allocation4]  }
  0x1e   : > { %p428_p12 = scmp.ne.s32.totalorder %s578_s30, %s427_s11  ;;  %s432_s18 = sshll.u32 %s494_s0, 4  ;;  %s433_s18 = int_to_ptr.vmem [resolvable:$false] %s432_s18 }
  0x1f   : > { %s434_s19 = scalar_lea.vmem %s433_s18, 256  ;;  %p435_p11 = scmp.lt.s32.totalorder %s578_s30, %s433_s18 }
  0x20   : > { %p430_p0 = pnand %p428_p12, %p414_p13  ;;  %p436_p2 = scmp.lt.s32.totalorder %s434_s19, %s427_s11 }
  0x22   : > { %p431_p10 = pneg %p430_p0  ;;  %p437_p3 = por %p436_p2, %p435_p11 }
  0x24   : > { %p438_p4 = pnand %p437_p3, %p431_p10 }
  0x26   : > { %441 = shalt.err (!%p438_p4)
}
  0x27   : > { %353 = dma.hbm_to_vmem [thread:$0]  (!%p574_p9), %s570_s28, 128, %s578_s30, %s125_s4  }
  0x28   : > { %p650_p1 = scmp.lt.s32.totalorder %s492_s16, 3  ;;  %p651_p5 = scmp.ge.s32.totalorder %s492_s16, 1 }
  0x2a   : > { %p144_p13 = pnand %p651_p5, %p650_p1 }
  0x2b   : > { %s149_s20 = sand.u32 (!%p144_p13), 1, %s476_s12  }
  0x2c   : > { %147 = sbr.rel (%p144_p13) target bundleno = 345 (0x159), region = 28  ;;  %s341_s23 = sshll.u32 (!%p144_p13), %s149_s20, 3 }
  0x2d   : > { %s150_s24 = scalar_lea.sflag (!%p144_p13), [#allocation5], %s149_s20  ;;  %s153_s25 = scalar_lea.vmem (!%p144_p13), [#allocation4], %s341_s23 }
  0x33   : > { %467 = dma.done.wait (%p557_p7), %s150_s24, 128  }
  0x34   : > { %469 = vsyncadd (%p557_p7), %s150_s24, 4294967168  ;;  %v495_v0 = vmov 0.0   ;;  %s183_s26 = sld [smem:[#allocation3]]  ;;  %v187_v3 = vld [vmem:[%s153_s25] sm:$0xff]  ;;  %vm193_vm0 = vcmask 1043456   ;;  %p174_p7 = scmp.lt.s32.totalorder %s484_s14, 1 }
  0x35   : > { %182 = vst [vmem:[#allocation2] sm:$0xf] %v495_v0  ;;  %vm254_vm1 = vcmask 3072  }
  0x36   : > { %s660_s14 = smov (!%p174_p7, %s484_s14), 1 }
  0x37   : > { %s342_s21 = sshll.u32 %s660_s14, 3 }
  0x38   : > { %s177_s30 = scalar_lea.vmem %s646_s2, %s342_s21 }
  0x3a   : > { %v184_v1 = vstv %s183_s26 }
  0x3b   : > { %404 = vrcp.f32 %v184_v1 }
  0x3c   : > { %v243_v45 = vld [vmem:[#allocation2] sm:$0xf] }
  0x45   : > { %v405_v2 = vpop.eup %404 }
  0x46   : > { %346 = vpush %v405_v2 }
  0x77   : > { %s347_s27 = spop %346 }
  0x78   : > { %v188_v4 = vstv %s347_s27 }
  0x79   : > { %v189_v5 = vmul.f32 %v188_v4, %v187_v3 }
  0x7b   : > { %v191_v6 = vcombine.high %v189_v5, %v189_v5  ;;  %v194_v7 = vsel %vm193_vm0, %v189_v5, -inf }
  0x7c   : > { %v195_v8 = vrot.slane %v194_v7, 4 }
  0x7d   : > { %v201_v9 = vsel %vm193_vm0, %v191_v6, -inf }
  0x7e   : > { %v196_v10 = vmax.f32 %v194_v7, %v195_v8  ;;  %v202_v11 = vrot.slane %v201_v9, 4 }
  0x80   : > { %v197_v12 = vrot.slane %v196_v10, 2  ;;  %v203_v13 = vmax.f32 %v201_v9, %v202_v11 }
  0x82   : > { %v198_v14 = vmax.f32 %v196_v10, %v197_v12  ;;  %v204_v15 = vrot.slane %v203_v13, 2 }
  0x84   : > { %v199_v16 = vrot.slane %v198_v14, 1  ;;  %v205_v17 = vmax.f32 %v203_v13, %v204_v15 }
  0x86   : > { %v206_v18 = vrot.slane %v205_v17, 1  ;;  %v200_v19 = vmax.f32 %v198_v14, %v199_v16 }
  0x88   : > { %v207_v20 = vmax.f32 %v205_v17, %v206_v18 }
  0x8a   : > { %v210_v21 = vcombine.low %v200_v19, %v207_v20 }
  0x8c   : > { %v212_v22 = vsub.f32 %v189_v5, %v210_v21 }
  0x8e   : > { %v213_v23 = vmul.f32 1.442695, %v212_v22 }
  0x90   : > { %406 = vpow2.f32 %v213_v23 }
  0x9a   : > { %v407_v24 = vpop.eup %406 }
  0x9b   : > { %v216_v25 = vcombine.high %v407_v24, %v407_v24  ;;  %v218_v26 = vsel %vm193_vm0, %v407_v24, 0.0 }
  0x9c   : > { %v219_v27 = vrot.slane %v218_v26, 4 }
  0x9d   : > { %v225_v28 = vsel %vm193_vm0, %v216_v25, 0.0 }
  0x9e   : > { %v220_v29 = vadd.f32 %v219_v27, %v218_v26  ;;  %v226_v30 = vrot.slane %v225_v28, 4 }
  0xa0   : > { %v221_v31 = vrot.slane %v220_v29, 2  ;;  %v227_v32 = vadd.f32 %v226_v30, %v225_v28 }
  0xa2   : > { %v222_v33 = vadd.f32 %v221_v31, %v220_v29  ;;  %v228_v34 = vrot.slane %v227_v32, 2 }
  0xa4   : > { %v223_v35 = vrot.slane %v222_v33, 1  ;;  %v229_v36 = vadd.f32 %v228_v34, %v227_v32 }
  0xa6   : > { %v224_v37 = vadd.f32 %v223_v35, %v222_v33  ;;  %v230_v38 = vrot.slane %v229_v36, 1 }
  0xa8   : > { %v231_v39 = vadd.f32 %v230_v38, %v229_v36  ;;  %408 = vrcp.f32 %v224_v37 }
  0xaa   : > { %410 = vrcp.f32 %v231_v39 }
  0xb2   : > { %v409_v40 = vpop.eup %408 }
  0xb4   : > { %v411_v41 = vpop.eup %410 }
  0xb5   : > { %v236_v42 = vcombine.low %v409_v40, %v411_v41 }
  0xb7   : > { %v238_v43 = vmul.f32 %v407_v24, %v236_v42 }
  0xb9   : > { %v240_v44 = vrot.slane %v238_v43, 4 }
  0xbb   : > { %v242_v46 = vadd.f32 %v240_v44, %v238_v43 }
  0xbd   : > { %v244_v47 = vadd.f32 %v243_v45, %v242_v46 }
  0xbf   : > { %245 = vst [vmem:[#allocation2] sm:$0xf] %v244_v47 }
  0xc6   : > { %v249_v48 = vld [vmem:[#allocation2] sm:$0xf] }
  0xc7   : > { %v250_v49 = vsel %vm193_vm0, %v249_v48, 0.0 }
  0xc8   : > { %251 = vadd.xlane.f32.xlu0 %v250_v49 }
 0x155   : > { %v252_v50 = vpop.xlane.xlu0 %251 }
 0x156   : > { %v253_v51 = vmul.f32 0.0625, %v252_v50 }
 0x158   : > { %255 = vst.msk [vmem:[%s177_s30] sm:$0xf] %vm254_vm1, %v253_v51  ;;  %256 = vst.msk [vmem:[%s177_s30 + $0x4] sm:$0xf] %vm254_vm1, %v253_v51 }
 0x159 PF: > { %s16_s16 = sadd.s32 1, %s492_s16   ;;  %s652_s11 = smov %s476_s12 }
 0x15a   : > { %p13_p9 = scmp.ge.s32.totalorder %s16_s16, 4   ;;  %s653_s12 = smov %s480_s13 }
 0x15b   : > { %s654_s13 = smov %s563_s22  ;;  %s655_s14 = smov %s488_s15 }
 0x15c   : > { %s656_s15 = smov %s658_s17  ;;  %15 = sbr.rel (!%p13_p9) target bundleno = 6 (0x6), region = 76 }
 0x163   :  { %276 = vsyncpa [#allocation5], 1 }
 0x164   :  { %278 = vsyncpa [#allocation5 + $0x1], 1 }

</bundles_post_ra>
